<compile_context>
chip_gen: v7x
topology: tpu7x:2x2x1
jax: 0.10.0
libtpu: 0.0.40
codegen_flags: <defaults>
</compile_context>

<pallas_src>
import jax
import jax.numpy as jnp
from jax.experimental import pallas as pl
from jax.experimental.pallas import tpu as pltpu


def _round_up(x, m):
    return ((x + m - 1) // m) * m


_MAX_TILE_K = 256 * 1024  # columns; upper bound on the D-tile width


def _make_gram_kernel(b, d, tk, use_vpu):
    """Kernel accumulating the raw (B, B) Grams of x1 and x2 over D-tiles."""
    need_mask = (d % tk) != 0  # static: only trace the mask when required

    def kernel(x1_ref, x2_ref, c1_ref, c2_ref):
        k = pl.program_id(0)

        @pl.when(k == 0)
        def _init():
            c1_ref[...] = jnp.zeros_like(c1_ref)
            c2_ref[...] = jnp.zeros_like(c2_ref)

        # Upcast before any VPU math (v5e has no bf16 vector ALUs).
        x1 = x1_ref[...].astype(jnp.float32)
        x2 = x2_ref[...].astype(jnp.float32)

        if need_mask:
            # Zero the out-of-bounds tail of the (possibly ragged) last tile.
            col = jax.lax.broadcasted_iota(jnp.int32, (b, tk), 1) + k * tk
            valid = col < d
            x1 = jnp.where(valid, x1, 0.0)
            x2 = jnp.where(valid, x2, 0.0)

        if use_vpu:
            # VPU Gram for tiny B: c[i, s] = sum_d x[i, d] * x[(i - s) % b, d]
            # i.e. the Gram in "rolled" column order (un-rolled in the wrapper).
            def rolled_gram(x):
                cols = []
                for s in range(b):
                    if s == 0:
                        xs = x
                    else:
                        xs = jnp.concatenate([x[b - s:, :], x[:b - s, :]],
                                             axis=0)
                    cols.append(jnp.sum(x * xs, axis=1, keepdims=True))
                return jnp.concatenate(cols, axis=1) if b > 1 else cols[0]

            c1_ref[...] += rolled_gram(x1)
            c2_ref[...] += rolled_gram(x2)
        else:
            # Large-B fallback: MXU matmul contracting the D (lane) axis.
            dims = (((1,), (1,)), ((), ()))
            c1_ref[...] += jax.lax.dot_general(
                x1, x1, dims, precision=jax.lax.Precision.HIGHEST,
                preferred_element_type=jnp.float32)
            c2_ref[...] += jax.lax.dot_general(
                x2, x2, dims, precision=jax.lax.Precision.HIGHEST,
                preferred_element_type=jnp.float32)

    return kernel


def diff_loss(input1, input2, *, tile_k=None):
    """Pallas implementation of DiffLoss.forward. Returns a float32 scalar."""
    b = input1.shape[0]
    x1 = input1.reshape(b, -1)
    x2 = input2.reshape(b, -1)
    assert x1.shape == x2.shape, "DiffLoss expects matching flattened shapes"
    d = x1.shape[1]

    # Keep bf16 as bf16 (halves DMA bytes); everything else is streamed as f32.
    if x1.dtype != jnp.bfloat16:
        x1 = x1.astype(jnp.float32)
        x2 = x2.astype(jnp.float32)
    itemsize = jnp.dtype(x1.dtype).itemsize
    sublane = 16 if itemsize == 2 else 8
    rows_pad = _round_up(b, sublane)            # physical sublane rows per tile

    # --- VMEM-budgeted D-tile -------------------------------------------------
    try:
        vmem_cap = int(pltpu.get_tpu_info().vmem_capacity_bytes)
    except Exception:
        vmem_cap = 64 << 20                     # conservative (v7x-sized) fallback
    buf_budget = vmem_cap // 4                  # 2 inputs x 2 pipeline buffers
    if tile_k is None:
        tk_cap = buf_budget // (4 * rows_pad * itemsize)
        tk_cap = max(128, min(_MAX_TILE_K, (tk_cap // 128) * 128))
    else:
        tk_cap = max(128, (int(tile_k) // 128) * 128)

    d128 = _round_up(d, 128)
    if d128 <= tk_cap:
        tk = d                                  # single step, full-extent block
    else:
        tk = tk_cap                             # lane-aligned streaming tile
    nk = -(-d // tk)

    use_vpu = b <= 8
    need = 4 * rows_pad * max(tk, 128) * itemsize + (4 << 20)
    vmem_limit = int(min(vmem_cap * 3 // 4, max(32 << 20, need)))

    kernel = _make_gram_kernel(b, d, tk, use_vpu)

    c1, c2 = pl.pallas_call(
        kernel,
        out_shape=(
            jax.ShapeDtypeStruct((b, b), jnp.float32),
            jax.ShapeDtypeStruct((b, b), jnp.float32),
        ),
        grid_spec=pltpu.PrefetchScalarGridSpec(
            num_scalar_prefetch=0,
            grid=(nk,),
            in_specs=[
                pl.BlockSpec((b, tk), lambda k: (0, k)),
                pl.BlockSpec((b, tk), lambda k: (0, k)),
            ],
            out_specs=[
                pl.BlockSpec((b, b), lambda k: (0, 0)),
                pl.BlockSpec((b, b), lambda k: (0, 0)),
            ],
        ),
        compiler_params=pltpu.CompilerParams(
            dimension_semantics=("arbitrary",),
            vmem_limit_bytes=vmem_limit,
        ),
        cost_estimate=pl.CostEstimate(
            flops=4 * b * b * d,
            transcendentals=0,
            bytes_accessed=2 * b * d * itemsize + 2 * b * b * 4,
        ),
    )(x1, x2)

    # --- O(B^2) finalize in plain JAX (tiny) -----------------------------------
    if use_vpu:
        # Un-roll: kernel returns c[i, s] = G[i, (i - s) % b].
        ii = jnp.arange(b)[:, None]
        jj = jnp.arange(b)[None, :]
        g1 = c1[ii, (ii - jj) % b]
        g2 = c2[ii, (ii - jj) % b]
    else:
        g1, g2 = c1, c2

    inv1 = 1.0 / (jnp.sqrt(jnp.diagonal(g1)) + 1e-6)   # detach() is a no-op fwd
    inv2 = 1.0 / (jnp.sqrt(jnp.diagonal(g2)) + 1e-6)
    g1n = g1 * jnp.outer(inv1, inv1)                   # x1n @ x1n^T
    g2n = g2 * jnp.outer(inv2, inv2)                   # x2n @ x2n^T
    # mean((x1n^T x2n)^2) = sum(g1n ⊙ g2n) / D^2
    return jnp.sum(g1n * g2n) / (jnp.float32(d) * jnp.float32(d))


def _diff_loss_ref(input1, input2):
    # Pure-JAX reference mirroring the PyTorch module (explicit D x D matrix).
    b = input1.shape[0]
    x1 = input1.reshape(b, -1).astype(jnp.float32)
    x2 = input2.reshape(b, -1).astype(jnp.float32)
    n1 = jnp.linalg.norm(x1, axis=1, keepdims=True)
    n2 = jnp.linalg.norm(x2, axis=1, keepdims=True)
    x1n = x1 / (n1 + 1e-6)
    x2n = x2 / (n2 + 1e-6)
    g = jnp.dot(x1n.T, x2n, precision=jax.lax.Precision.HIGHEST)
    return jnp.mean(g ** 2)


if __name__ == "__main__":
    key = jax.random.PRNGKey(0)
    k1, k2, k3, k4 = jax.random.split(key, 4)

    # NCHW feature maps (batch=2, channels=4, spatial=16 -> D = 1024):
    # exercises the single-step full-block fast path.
    x1 = jax.random.normal(k1, (2, 4, 16, 16), dtype=jnp.float32)
    x2 = jax.random.normal(k2, (2, 4, 16, 16), dtype=jnp.float32)
    loss = jax.block_until_ready(diff_loss(x1, x2))
    ref = jax.block_until_ready(_diff_loss_ref(x1, x2))
    assert jnp.allclose(loss, ref, rtol=1e-3, atol=1e-8), (loss, ref)

    # Ragged D (D = 1200) with a small forced tile: exercises multi-step
    # accumulation and the in-kernel tail mask (no wrapper-level padding).
    y1 = jax.random.normal(k3, (2, 3, 20, 20), dtype=jnp.float32)
    y2 = jax.random.normal(k4, (2, 3, 20, 20), dtype=jnp.float32)
    loss2 = jax.block_until_ready(diff_loss(y1, y2, tile_k=256))
    ref2 = jax.block_until_ready(_diff_loss_ref(y1, y2))
    assert jnp.allclose(loss2, ref2, rtol=1e-3, atol=1e-8), (loss2, ref2)

    print("KERNEL_OK")
</pallas_src>

<mosaic_0001>
module attributes {stable_mosaic.version = 11 : i64} {
  func.func @kernel(%arg0: i32, %arg1: memref<2x1024xf32, #tpu.memory_space<vmem>>, %arg2: memref<2x1024xf32, #tpu.memory_space<vmem>>, %arg3: memref<2x2xf32, #tpu.memory_space<vmem>>, %arg4: memref<2x2xf32, #tpu.memory_space<vmem>>) attributes {dimension_semantics = [#tpu.dimension_semantics<arbitrary>], iteration_bounds = array<i64: 1>, scalar_prefetch = 0 : i64, scratch_operands = 0 : i64, tpu.core_type = #tpu.core_type<tc>, window_params = [{transform_indices = @transform_0, window_bounds = array<i64: 2, 1024>}, {transform_indices = @transform_1, window_bounds = array<i64: 2, 1024>}, {pipeline_mode = #tpu.pipeline_mode<synchronous>, transform_indices = @transform_2, window_bounds = array<i64: 2, 2>}, {pipeline_mode = #tpu.pipeline_mode<synchronous>, transform_indices = @transform_3, window_bounds = array<i64: 2, 2>}]} {
    %c0_i32 = arith.constant 0 : i32
    %0 = arith.cmpi eq, %arg0, %c0_i32 : i32
    %1 = arith.extui %0 : i1 to i32
    %c0_i32_0 = arith.constant 0 : i32
    %2 = arith.cmpi ne, %1, %c0_i32_0 : i32
    scf.if %2 {
      %cst_15 = arith.constant 0.000000e+00 : f32
      %31 = vector.broadcast %cst_15 : f32 to vector<2x2xf32>
      %c0_16 = arith.constant 0 : index
      %c0_17 = arith.constant 0 : index
      %32 = vector.load %arg3[%c0_16, %c0_17] : memref<2x2xf32, #tpu.memory_space<vmem>>, vector<2x2xf32>
      tpu.vector_store %arg3[%c0_16, %c0_17], %31 {strides = array<i32>} : memref<2x2xf32, #tpu.memory_space<vmem>>, vector<2x2xf32>,
      %cst_18 = arith.constant 0.000000e+00 : f32
      %33 = vector.broadcast %cst_18 : f32 to vector<2x2xf32>
      %c0_19 = arith.constant 0 : index
      %c0_20 = arith.constant 0 : index
      %34 = vector.load %arg4[%c0_19, %c0_20] : memref<2x2xf32, #tpu.memory_space<vmem>>, vector<2x2xf32>
      tpu.vector_store %arg4[%c0_19, %c0_20], %33 {strides = array<i32>} : memref<2x2xf32, #tpu.memory_space<vmem>>, vector<2x2xf32>,
    } else {
    }
    %c0 = arith.constant 0 : index
    %c0_1 = arith.constant 0 : index
    %3 = vector.load %arg1[%c0, %c0_1] : memref<2x1024xf32, #tpu.memory_space<vmem>>, vector<2x1024xf32>
    %c0_2 = arith.constant 0 : index
    %c0_3 = arith.constant 0 : index
    %4 = vector.load %arg2[%c0_2, %c0_3] : memref<2x1024xf32, #tpu.memory_space<vmem>>, vector<2x1024xf32>
    %c0_4 = arith.constant 0 : index
    %c0_5 = arith.constant 0 : index
    %5 = vector.load %arg3[%c0_4, %c0_5] : memref<2x2xf32, #tpu.memory_space<vmem>>, vector<2x2xf32>
    %6 = arith.mulf %3, %3 : vector<2x1024xf32>
    %cst = arith.constant dense<0.000000e+00> : vector<2xf32>
    %7 = vector.multi_reduction <add>, %6, %cst [1] : vector<2x1024xf32> to vector<2xf32>
    %8 = vector.shape_cast %7 : vector<2xf32> to vector<2x1xf32>
    %9 = vector.extract_strided_slice %3 {offsets = [1, 0], sizes = [1, 1024], strides = [1, 1]} : vector<2x1024xf32> to vector<1x1024xf32>
    %10 = vector.extract_strided_slice %3 {offsets = [0, 0], sizes = [1, 1024], strides = [1, 1]} : vector<2x1024xf32> to vector<1x1024xf32>
    %11 = tpu.concatenate %9, %10 in 0 : vector<1x1024xf32>, vector<1x1024xf32> -> vector<2x1024xf32>
    %12 = arith.mulf %3, %11 : vector<2x1024xf32>
    %cst_6 = arith.constant dense<0.000000e+00> : vector<2xf32>
    %13 = vector.multi_reduction <add>, %12, %cst_6 [1] : vector<2x1024xf32> to vector<2xf32>
    %14 = vector.shape_cast %13 : vector<2xf32> to vector<2x1xf32>
    %15 = tpu.concatenate %8, %14 in 1 : vector<2x1xf32>, vector<2x1xf32> -> vector<2x2xf32>
    %16 = arith.addf %5, %15 : vector<2x2xf32>
    %c0_7 = arith.constant 0 : index
    %c0_8 = arith.constant 0 : index
    %17 = vector.load %arg3[%c0_7, %c0_8] : memref<2x2xf32, #tpu.memory_space<vmem>>, vector<2x2xf32>
    tpu.vector_store %arg3[%c0_7, %c0_8], %16 {strides = array<i32>} : memref<2x2xf32, #tpu.memory_space<vmem>>, vector<2x2xf32>,
    %c0_9 = arith.constant 0 : index
    %c0_10 = arith.constant 0 : index
    %18 = vector.load %arg4[%c0_9, %c0_10] : memref<2x2xf32, #tpu.memory_space<vmem>>, vector<2x2xf32>
    %19 = arith.mulf %4, %4 : vector<2x1024xf32>
    %cst_11 = arith.constant dense<0.000000e+00> : vector<2xf32>
    %20 = vector.multi_reduction <add>, %19, %cst_11 [1] : vector<2x1024xf32> to vector<2xf32>
    %21 = vector.shape_cast %20 : vector<2xf32> to vector<2x1xf32>
    %22 = vector.extract_strided_slice %4 {offsets = [1, 0], sizes = [1, 1024], strides = [1, 1]} : vector<2x1024xf32> to vector<1x1024xf32>
    %23 = vector.extract_strided_slice %4 {offsets = [0, 0], sizes = [1, 1024], strides = [1, 1]} : vector<2x1024xf32> to vector<1x1024xf32>
    %24 = tpu.concatenate %22, %23 in 0 : vector<1x1024xf32>, vector<1x1024xf32> -> vector<2x1024xf32>
    %25 = arith.mulf %4, %24 : vector<2x1024xf32>
    %cst_12 = arith.constant dense<0.000000e+00> : vector<2xf32>
    %26 = vector.multi_reduction <add>, %25, %cst_12 [1] : vector<2x1024xf32> to vector<2xf32>
    %27 = vector.shape_cast %26 : vector<2xf32> to vector<2x1xf32>
    %28 = tpu.concatenate %21, %27 in 1 : vector<2x1xf32>, vector<2x1xf32> -> vector<2x2xf32>
    %29 = arith.addf %18, %28 : vector<2x2xf32>
    %c0_13 = arith.constant 0 : index
    %c0_14 = arith.constant 0 : index
    %30 = vector.load %arg4[%c0_13, %c0_14] : memref<2x2xf32, #tpu.memory_space<vmem>>, vector<2x2xf32>
    tpu.vector_store %arg4[%c0_13, %c0_14], %29 {strides = array<i32>} : memref<2x2xf32, #tpu.memory_space<vmem>>, vector<2x2xf32>,
    return
  }
  func.func @transform_0(%arg0: i32) -> (i32, i32) {
    %c0_i32 = arith.constant 0 : i32
    %c0_i32_0 = arith.constant 0 : i32
    return %c0_i32, %arg0 : i32, i32
  }
  func.func @transform_1(%arg0: i32) -> (i32, i32) {
    %c0_i32 = arith.constant 0 : i32
    %c0_i32_0 = arith.constant 0 : i32
    return %c0_i32, %arg0 : i32, i32
  }
  func.func @transform_2(%arg0: i32) -> (i32, i32) {
    %c0_i32 = arith.constant 0 : i32
    %c0_i32_0 = arith.constant 0 : i32
    %c0_i32_1 = arith.constant 0 : i32
    return %c0_i32, %c0_i32_0 : i32, i32
  }
  func.func @transform_3(%arg0: i32) -> (i32, i32) {
    %c0_i32 = arith.constant 0 : i32
    %c0_i32_0 = arith.constant 0 : i32
    %c0_i32_1 = arith.constant 0 : i32
    return %c0_i32, %c0_i32_0 : i32, i32
  }
}

</mosaic_0001>

<bundles_post_ra>
// kernel: tpu_custom_call.1
= control target key start
LH: loop header
LB: loop body
LE: loop exit
PB: predicated region body
PF: predicated region fallthrough
CT: control target
= control target key end

     0   :  { %9 = vsyncpa [#allocation3], 0  ;;  %s980_s0 = inlined_call_operand.hbm [shape: f32[2,1024], index: 0, kind: input, shape index: {}]   ;;  %s981_s1 = inlined_call_operand.hbm [shape: f32[2,1024], index: 1, kind: input, shape index: {}]   ;;  %s982_s2 = inlined_call_operand.hbm [shape: f32[2,2], index: 2, kind: output, shape index: {0}]   ;;  %s983_s3 = inlined_call_operand.hbm [shape: f32[2,2], index: 3, kind: output, shape index: {1}]  }
   0x1   :  { %10 = vsyncpa [#allocation6], 0 }
   0x2   :  { %11 = vsyncpa [#allocation4], 0 }
   0x3   :  { %12 = vsyncpa [#allocation9], 0  ;;  %s714_s12 = smov [#allocation2]   ;;  %s715_s14 = smov [#allocation5]  }
   0x4   :  { %s19_s13 = sshll.u32 %s714_s12, 4  ;;  %s29_s15 = sshll.u32 %s715_s14, 4  ;;  %s20_s13 = int_to_ptr.vmem [resolvable:$true] %s19_s13  ;;  %s30_s15 = int_to_ptr.vmem [resolvable:$true] %s29_s15 }
   0x5   :  { %s618_s18 = scalar_lea.hbm %s980_s0, 256 }
   0x6   :  { %p619_p0 = scmp.ne.s32.totalorder %s980_s0, %s618_s18  ;;  %p622_p1 = scmp.lt.u32.totalorder %s618_s18, %s980_s0 }
   0x8   :  { %p624_p2 = pnand %p622_p1, %p619_p0 }
   0xa   :  { %627 = shalt.err (!%p624_p2)
}
   0xb   :  { %s628_s23 = scalar_lea.vmem %s20_s13, 256  ;;  %p633_p4 = scmp.lt.s32.totalorder %s20_s13, %s20_s13 }
   0xc   :  { %p629_p3 = scmp.ne.s32.totalorder %s20_s13, %s628_s23  ;;  %p634_p5 = scmp.lt.s32.totalorder %s628_s23, %s628_s23 }
   0xe   :  { %p635_p6 = por %p634_p5, %p633_p4 }
  0x10   :  { %p636_p7 = pnand %p635_p6, %p629_p3 }
  0x12   :  { %639 = shalt.err (!%p636_p7)
}
  0x13   :  { %22 = dma.hbm_to_vmem [thread:$0]  %s980_s0, 256, %s20_s13, [#allocation3]  }
  0x14   :  { %s640_s28 = scalar_lea.hbm %s981_s1, 256 }
  0x15   :  { %p641_p8 = scmp.ne.s32.totalorder %s981_s1, %s640_s28  ;;  %p644_p9 = scmp.lt.u32.totalorder %s640_s28, %s981_s1 }
  0x17   :  { %p646_p10 = pnand %p644_p9, %p641_p8 }
  0x19   :  { %649 = shalt.err (!%p646_p10)
}
  0x1a   :  { %s650_s6 = scalar_lea.vmem %s30_s15, 256  ;;  %p655_p12 = scmp.lt.s32.totalorder %s30_s15, %s30_s15 }
  0x1b   :  { %p651_p11 = scmp.ne.s32.totalorder %s30_s15, %s650_s6  ;;  %p656_p13 = scmp.lt.s32.totalorder %s650_s6, %s650_s6 }
  0x1d   :  { %p657_p0 = por %p656_p13, %p655_p12 }
  0x1f   :  { %p658_p1 = pnand %p657_p0, %p651_p11 }
  0x21   :  { %661 = shalt.err (!%p658_p1)
}
  0x22   :  { %32 = dma.hbm_to_vmem [thread:$0]  %s981_s1, 256, %s30_s15, [#allocation6]  }
  0x23   :  { %706 = dma.done.wait [#allocation3], 256  }
  0x24   :  { %707 = vsyncadd [#allocation3], 4294967040 }
  0x25   :  { %708 = dma.done.wait [#allocation6], 256  }
  0x26   :  { %709 = vsyncadd [#allocation6], 4294967040  ;;  %vm43_vm0 = vcmask 9216   ;;  %v59_v0 = vlaneseq  ;;  %v716_v1 = vmov 0.0   ;;  %v717_v2 = vmov 1983009808  }
  0x27   :  { %44 = vst.msk [vmem:[#allocation7] sm:$0x3] %vm43_vm0, %v716_v1  ;;  %45 = vst.msk [vmem:[#allocation8] sm:$0x3] %vm43_vm0, %v716_v1  ;;  %v57_v3 = vunpack.c.l.s4 %v717_v2  ;;  %vm97_vm1 = vcmask 1041408   ;;  %v776_v11 = vld [vmem:[#allocation5] sm:$0xff] }
  0x28   :  { %v60_v4 = vshrl.u32 %v59_v0, 7  ;;  %v778_v12 = vld [vmem:[#allocation5 + $0x8] sm:$0xff]  ;;  %v782_v14 = vld [vmem:[#allocation2] sm:$0xff]  ;;  %v319_v18 = vmul.f32 %v776_v11, %v776_v11  ;;  %v794_v20 = vld [vmem:[#allocation2 + $0x8] sm:$0xff]  ;;  %vm197_vm2 = vcmask 1040384   ;;  %vm313_vm3 = vcmask 7168  }
  0x29   :  { %v58_v5 = vunpack.c.0.s8 %v57_v3  ;;  %v320_v19 = vmul.f32 %v778_v12, %v778_v12  ;;  %v51_v21 = vmul.f32 %v782_v14, %v782_v14  ;;  %v52_v23 = vmul.f32 %v794_v20, %v794_v20  ;;  %s718_s1 = smov [#allocation8]  }
  0x2a   :  { %v766_v6 = vsub.s32 1, %v60_v4  ;;  %v768_v7 = vsub.s32 3, %v60_v4  ;;  %v770_v8 = vsub.s32 5, %v60_v4  ;;  %v772_v9 = vsub.s32 7, %v60_v4  ;;  %s598_s8 = sshll.u32 %s718_s1, 4  ;;  %s599_s8 = int_to_ptr.vmem [resolvable:$true] %s598_s8 }
  0x2b   :  { %v774_v10 = vsub.s32 0, %v60_v4  ;;  %v780_v13 = vsub.s32 %v58_v5, %v60_v4  ;;  %v784_v15 = vsub.s32 2, %v60_v4  ;;  %v786_v16 = vsub.s32 4, %v60_v4  ;;  %s662_s9 = scalar_lea.vmem %s599_s8, 32  ;;  %p667_p3 = scmp.lt.s32.totalorder %s599_s8, %s599_s8 }
  0x2c   :  { %v788_v17 = vsub.s32 6, %v60_v4  ;;  %v387_v22 = vrot.slane %v776_v11, %v766_v6  ;;  %v391_v24 = vrot.slane %v776_v11, %v768_v7  ;;  %v395_v25 = vrot.slane %v776_v11, %v770_v8  ;;  %p663_p2 = scmp.ne.s32.totalorder %s599_s8, %s662_s9  ;;  %p668_p4 = scmp.lt.s32.totalorder %s662_s9, %s662_s9 }
  0x2d   :  { %v399_v26 = vrot.slane %v776_v11, %v772_v9  ;;  %v323_v27 = vcombine.high %v319_v18, %v319_v18  ;;  %v330_v28 = vrot.slane %v319_v18, %v780_v13  ;;  %v340_v29 = vcombine.high %v320_v19, %v320_v19 }
  0x2e   :  { %v347_v30 = vrot.slane %v320_v19, %v780_v13  ;;  %v55_v31 = vcombine.high %v51_v21, %v51_v21  ;;  %v62_v32 = vrot.slane %v51_v21, %v780_v13  ;;  %v72_v33 = vcombine.high %v52_v23, %v52_v23  ;;  %p669_p5 = por %p668_p4, %p667_p3 }
  0x2f   :  { %v79_v34 = vrot.slane %v52_v23, %v780_v13  ;;  %v337_v35 = vrot.slane %v323_v27, %v780_v13  ;;  %v338_v36 = vcombine.high %v330_v28, %v330_v28  ;;  %v354_v37 = vrot.slane %v340_v29, %v780_v13 }
  0x30   :  { %v355_v38 = vcombine.high %v347_v30, %v347_v30  ;;  %v365_v39 = vsel %vm97_vm1, %v330_v28, 0.0  ;;  %v372_v40 = vsel %vm97_vm1, %v347_v30, 0.0  ;;  %v69_v41 = vrot.slane %v55_v31, %v780_v13  ;;  %p670_p6 = pnand %p669_p5, %p663_p2 }
  0x31   :  { %v70_v42 = vcombine.high %v62_v32, %v62_v32  ;;  %v339_v43 = vcombine.high %v337_v35, %v337_v35  ;;  %v356_v44 = vcombine.high %v354_v37, %v354_v37  ;;  %v366_v45 = vsel %vm97_vm1, %v338_v36, 0.0 }
  0x32   :  { %v368_v46 = vsel %vm97_vm1, %v337_v35, 0.0  ;;  %v367_v47 = vadd.f32 %v366_v45, %v365_v39  ;;  %v374_v48 = vsel %vm97_vm1, %v355_v38, 0.0  ;;  %v376_v49 = vsel %vm97_vm1, %v354_v37, 0.0 }
  0x33   :  { %v71_v50 = vcombine.high %v69_v41, %v69_v41  ;;  %v370_v51 = vsel %vm97_vm1, %v339_v43, 0.0  ;;  %v378_v52 = vsel %vm97_vm1, %v356_v44, 0.0  ;;  %v86_v53 = vrot.slane %v72_v33, %v780_v13 }
  0x34   :  { %v87_v54 = vcombine.high %v79_v34, %v79_v34  ;;  %v369_v55 = vadd.f32 %v368_v46, %v367_v47  ;;  %v98_v56 = vsel %vm97_vm1, %v62_v32, 0.0  ;;  %v99_v57 = vsel %vm97_vm1, %v70_v42, 0.0 }
  0x35   :  { %v101_v58 = vsel %vm97_vm1, %v69_v41, 0.0  ;;  %v88_v59 = vcombine.high %v86_v53, %v86_v53  ;;  %v100_v60 = vadd.f32 %v99_v57, %v98_v56  ;;  %v103_v61 = vsel %vm97_vm1, %v71_v50, 0.0 }
  0x36   :  { %v105_v62 = vsel %vm97_vm1, %v79_v34, 0.0  ;;  %v371_v63 = vadd.f32 %v370_v51, %v369_v55  ;;  %v107_v0 = vsel %vm97_vm1, %v87_v54, 0.0  ;;  %v109_v1 = vsel %vm97_vm1, %v86_v53, 0.0 }
  0x37   :  { %v403_v2 = vrot.slane %v778_v12, %v766_v6  ;;  %v102_v3 = vadd.f32 %v101_v58, %v100_v60  ;;  %v111_v4 = vsel %vm97_vm1, %v88_v59, 0.0  ;;  %v407_v5 = vrot.slane %v778_v12, %v768_v7 }
  0x38   :  { %v411_v18 = vrot.slane %v778_v12, %v770_v8  ;;  %v373_v19 = vadd.f32 %v372_v40, %v371_v63  ;;  %v415_v21 = vrot.slane %v778_v12, %v772_v9  ;;  %v427_v23 = vrot.slane %v776_v11, %v774_v10 }
  0x39   :  { %v431_v27 = vrot.slane %v776_v11, %v784_v15  ;;  %v104_v28 = vadd.f32 %v103_v61, %v102_v3  ;;  %v435_v29 = vrot.slane %v776_v11, %v786_v16  ;;  %v439_v30 = vrot.slane %v776_v11, %v788_v17 }
  0x3a   :  { %v443_v31 = vrot.slane %v778_v12, %v774_v10  ;;  %v375_v32 = vadd.f32 %v374_v48, %v373_v19  ;;  %v447_v33 = vrot.slane %v778_v12, %v784_v15  ;;  %v451_v34 = vrot.slane %v778_v12, %v786_v16 }
  0x3b   :  { %v455_v35 = vrot.slane %v778_v12, %v788_v17  ;;  %v106_v36 = vadd.f32 %v105_v62, %v104_v28  ;;  %v464_v37 = vsel %vm197_vm2, %v387_v22, %v427_v23  ;;  %v465_v38 = vsel %vm197_vm2, %v391_v24, %v431_v27 }
  0x3c   :  { %v466_v39 = vsel %vm197_vm2, %v395_v25, %v435_v29  ;;  %v377_v40 = vadd.f32 %v376_v49, %v375_v32  ;;  %v467_v41 = vsel %vm197_vm2, %v399_v26, %v439_v30  ;;  %v468_v42 = vsel %vm197_vm2, %v403_v2, %v443_v31 }
  0x3d   :  { %v469_v22 = vsel %vm197_vm2, %v407_v5, %v447_v33  ;;  %v108_v43 = vadd.f32 %v107_v0, %v106_v36  ;;  %v470_v44 = vsel %vm197_vm2, %v411_v18, %v451_v34  ;;  %v471_v24 = vsel %vm197_vm2, %v415_v21, %v455_v35 }
  0x3e   :  { %v480_v45 = vcombine.low %v464_v37, %v465_v38  ;;  %v379_v46 = vadd.f32 %v378_v52, %v377_v40  ;;  %v481_v47 = vcombine.low %v466_v39, %v467_v41  ;;  %v497_v48 = vcombine.low %v468_v42, %v469_v22 }
  0x3f   :  { %v498_v25 = vcombine.low %v470_v44, %v471_v24  ;;  %v110_v49 = vadd.f32 %v109_v1, %v108_v43  ;;  %v120_v55 = vrot.slane %v782_v14, %v766_v6  ;;  %v124_v52 = vrot.slane %v782_v14, %v768_v7 }
  0x40   :  { %v488_v50 = vrot.slane %v480_v45, %v780_v13  ;;  %380 = vadd.xlane.f32.xlu1 %v379_v46  ;;  %v495_v26 = vrot.slane %v481_v47, %v780_v13  ;;  %v505_v51 = vrot.slane %v497_v48, %v780_v13  ;;  %v128_v58 = vrot.slane %v782_v14, %v770_v8 }
  0x41   :  { %v512_v53 = vrot.slane %v498_v25, %v780_v13  ;;  %v112_v54 = vadd.f32 %v111_v4, %v110_v49  ;;  %v132_v59 = vrot.slane %v782_v14, %v772_v9  ;;  %v136_v60 = vrot.slane %v794_v20, %v766_v6 }
  0x42   :  { %v496_v56 = vcombine.low %v488_v50, %v495_v26  ;;  %v140_v61 = vrot.slane %v794_v20, %v768_v7  ;;  %v160_v62 = vrot.slane %v782_v14, %v774_v10  ;;  %v164_v63 = vrot.slane %v782_v14, %v784_v15 }
  0x43   :  { %v513_v57 = vcombine.low %v505_v51, %v512_v53  ;;  %113 = vadd.xlane.f32.xlu0 %v112_v54  ;;  %v168_v2 = vrot.slane %v782_v14, %v786_v16  ;;  %v172_v3 = vrot.slane %v782_v14, %v788_v17  ;;  %v144_v6 = vrot.slane %v794_v20, %v770_v8 }
  0x44   :  { %v516_v0 = vmul.f32 %v496_v56, %v776_v11  ;;  %v176_v7 = vrot.slane %v794_v20, %v774_v10  ;;  %v180_v4 = vrot.slane %v794_v20, %v784_v15  ;;  %v184_v11 = vrot.slane %v794_v20, %v786_v16 }
  0x45   :  { %v517_v1 = vmul.f32 %v513_v57, %v778_v12  ;;  %v148_v18 = vrot.slane %v794_v20, %v772_v9  ;;  %v188_v19 = vrot.slane %v794_v20, %v788_v17  ;;  %v198_v10 = vsel %vm197_vm2, %v120_v55, %v160_v62 }
  0x46   :  { %v520_v5 = vcombine.high %v516_v0, %v516_v0  ;;  %v527_v12 = vrot.slane %v516_v0, %v780_v13  ;;  %v199_v23 = vsel %vm197_vm2, %v124_v52, %v164_v63  ;;  %v200_v16 = vsel %vm197_vm2, %v128_v58, %v168_v2 }
  0x47   :  { %v537_v21 = vcombine.high %v517_v1, %v517_v1  ;;  %v544_v8 = vrot.slane %v517_v1, %v780_v13  ;;  %v201_v28 = vsel %vm197_vm2, %v132_v59, %v172_v3  ;;  %v202_v9 = vsel %vm197_vm2, %v136_v60, %v176_v7 }
  0x48   :  { %v534_v15 = vrot.slane %v520_v5, %v780_v13  ;;  %v535_v27 = vcombine.high %v527_v12, %v527_v12  ;;  %v562_v29 = vsel %vm97_vm1, %v527_v12, 0.0  ;;  %v203_v17 = vsel %vm197_vm2, %v140_v61, %v180_v4 }
  0x49   :  { %v204_v30 = vsel %vm197_vm2, %v144_v6, %v184_v11  ;;  %v205_v34 = vsel %vm197_vm2, %v148_v18, %v188_v19  ;;  %v551_v35 = vrot.slane %v537_v21, %v780_v13  ;;  %v214_v37 = vcombine.low %v198_v10, %v199_v23 }
  0x4a   :  { %v536_v31 = vcombine.high %v534_v15, %v534_v15  ;;  %v563_v32 = vsel %vm97_vm1, %v535_v27, 0.0  ;;  %v565_v33 = vsel %vm97_vm1, %v534_v15, 0.0  ;;  %v552_v38 = vcombine.high %v544_v8, %v544_v8  ;;  %v318_v27 = vld [vmem:[#allocation8] sm:$0x3] }
  0x4b   :  { %v564_v36 = vadd.f32 %v563_v32, %v562_v29  ;;  %v215_v40 = vcombine.low %v200_v16, %v201_v28  ;;  %v231_v41 = vcombine.low %v202_v9, %v203_v17  ;;  %v222_v22 = vrot.slane %v214_v37, %v780_v13 }
  0x4c   :  { %v567_v39 = vsel %vm97_vm1, %v536_v31, 0.0  ;;  %v232_v43 = vcombine.low %v204_v30, %v205_v34  ;;  %v569_v44 = vsel %vm97_vm1, %v544_v8, 0.0  ;;  %v553_v48 = vcombine.high %v551_v35, %v551_v35 }
  0x4d   :  { %v566_v42 = vadd.f32 %v565_v33, %v564_v36  ;;  %v229_v24 = vrot.slane %v215_v40, %v780_v13  ;;  %v239_v45 = vrot.slane %v231_v41, %v780_v13  ;;  %v571_v25 = vsel %vm97_vm1, %v552_v38, 0.0 }
  0x4e   :  { %v246_v47 = vrot.slane %v232_v43, %v780_v13  ;;  %v573_v51 = vsel %vm97_vm1, %v551_v35, 0.0  ;;  %v575_v52 = vsel %vm97_vm1, %v553_v48, 0.0 }
  0x4f   :  { %v568_v46 = vadd.f32 %v567_v39, %v566_v42  ;;  %v230_v49 = vcombine.low %v222_v22, %v229_v24 }
  0x50   :  { %v247_v26 = vcombine.low %v239_v45, %v246_v47 }
  0x51   :  { %v570_v50 = vadd.f32 %v569_v44, %v568_v46  ;;  %v250_v53 = vmul.f32 %v230_v49, %v782_v14 }
  0x52   :  { %v251_v55 = vmul.f32 %v247_v26, %v794_v20 }
  0x53   :  { %v572_v54 = vadd.f32 %v571_v25, %v570_v50  ;;  %v254_v56 = vcombine.high %v250_v53, %v250_v53  ;;  %v261_v57 = vrot.slane %v250_v53, %v780_v13 }
  0x54   :  { %v271_v59 = vcombine.high %v251_v55, %v251_v55  ;;  %v278_v62 = vrot.slane %v251_v55, %v780_v13 }
  0x55   :  { %v574_v58 = vadd.f32 %v573_v51, %v572_v54  ;;  %v268_v60 = vrot.slane %v254_v56, %v780_v13  ;;  %v269_v61 = vcombine.high %v261_v57, %v261_v57  ;;  %v296_v63 = vsel %vm97_vm1, %v261_v57, 0.0 }
  0x56   :  { %v285_v3 = vrot.slane %v271_v59, %v780_v13  ;;  %v286_v6 = vcombine.high %v278_v62, %v278_v62  ;;  %v303_v11 = vsel %vm97_vm1, %v278_v62, 0.0 }
  0x57   :  { %v576_v0 = vadd.f32 %v575_v52, %v574_v58  ;;  %v270_v1 = vcombine.high %v268_v60, %v268_v60  ;;  %v297_v14 = vsel %vm97_vm1, %v269_v61, 0.0  ;;  %v299_v20 = vsel %vm97_vm1, %v268_v60, 0.0 }
  0x58   :  { %v298_v2 = vadd.f32 %v297_v14, %v296_v63  ;;  %v287_v12 = vcombine.high %v285_v3, %v285_v3  ;;  %v305_v18 = vsel %vm97_vm1, %v286_v6, 0.0  ;;  %v307_v21 = vsel %vm97_vm1, %v285_v3, 0.0 }
  0x59   :  { %577 = vadd.xlane.f32.xlu1 %v576_v0  ;;  %v301_v7 = vsel %vm97_vm1, %v270_v1, 0.0 }
  0x5a   :  { %v300_v4 = vadd.f32 %v299_v20, %v298_v2  ;;  %v309_v10 = vsel %vm97_vm1, %v287_v12, 0.0 }
  0x5c   :  { %v302_v5 = vadd.f32 %v301_v7, %v300_v4 }
  0x5e   :  { %v304_v19 = vadd.f32 %v303_v11, %v302_v5 }
  0x60   :  { %v306_v8 = vadd.f32 %v305_v18, %v304_v19 }
  0x62   :  { %v308_v23 = vadd.f32 %v307_v21, %v306_v8 }
  0x64   :  { %v310_v15 = vadd.f32 %v309_v10, %v308_v23 }
  0x66   :  { %311 = vadd.xlane.f32.xlu0 %v310_v15 }
  0xcd   :  { %v381_v13 = vpop.xlane.xlu1 %380 }
  0xe6   :  { %v578_v16 = vpop.xlane.xlu1 %577 }
  0xe7   :  { %v579_v28 = vsel %vm313_vm3, %v381_v13, %v578_v16 }
  0xe8   :  { %v580_v29 = vadd.f32 %v579_v28, %v318_v27 }
  0xea   :  { %581 = vst.msk [vmem:[#allocation8] sm:$0x3] %vm43_vm0, %v580_v29 }
  0xeb   :  { %673 = shalt.err (!%p670_p6)
}
  0xec   :  { %s674_s12 = scalar_lea.hbm %s983_s3, 32 }
  0xed   :  { %p675_p7 = scmp.ne.s32.totalorder %s983_s3, %s674_s12  ;;  %p678_p8 = scmp.lt.u32.totalorder %s674_s12, %s983_s3 }
  0xef   :  { %p680_p9 = pnand %p678_p8, %p675_p7 }
  0xf1   :  { %683 = shalt.err (!%p680_p9)
}
  0xf2   :  { %601 = dma.vmem_to_hbm [thread:$0]  %s599_s8, 32, %s983_s3, [#allocation9]   ;;  %v114_v9 = vpop.xlane.xlu0 %113  ;;  %v50_v17 = vld [vmem:[#allocation7] sm:$0x3] }
  0xf3   :  { %s719_s19 = smov [#allocation7]  }
  0xf4   :  { %s588_s20 = sshll.u32 %s719_s19, 4  ;;  %s589_s20 = int_to_ptr.vmem [resolvable:$true] %s588_s20 }
  0xf5   :  { %s684_s21 = scalar_lea.vmem %s589_s20, 32  ;;  %p689_p11 = scmp.lt.s32.totalorder %s589_s20, %s589_s20 }
  0xf6   :  { %v312_v30 = vpop.xlane.xlu0 %311  ;;  %p685_p10 = scmp.ne.s32.totalorder %s589_s20, %s684_s21  ;;  %p690_p12 = scmp.lt.s32.totalorder %s684_s21, %s684_s21 }
  0xf7   :  { %v314_v31 = vsel %vm313_vm3, %v114_v9, %v312_v30 }
  0xf8   :  { %v315_v32 = vadd.f32 %v314_v31, %v50_v17  ;;  %p691_p13 = por %p690_p12, %p689_p11 }
  0xfa   :  { %317 = vst.msk [vmem:[#allocation7] sm:$0x3] %vm43_vm0, %v315_v32  ;;  %p692_p0 = pnand %p691_p13, %p685_p10 }
  0xfc   :  { %695 = shalt.err (!%p692_p0)
}
  0xfd   :  { %s696_s23 = scalar_lea.hbm %s982_s2, 32 }
  0xfe   :  { %p697_p1 = scmp.ne.s32.totalorder %s982_s2, %s696_s23  ;;  %p700_p2 = scmp.lt.u32.totalorder %s696_s23, %s982_s2 }
 0x100   :  { %p702_p3 = pnand %p700_p2, %p697_p1 }
 0x102   :  { %705 = shalt.err (!%p702_p3)
}
 0x103   :  { %591 = dma.vmem_to_hbm [thread:$0]  %s589_s20, 32, %s982_s2, [#allocation4]  }
 0x104   :  { %710 = dma.done.wait [#allocation4], 32  }
 0x105   :  { %711 = vsyncadd [#allocation4], 4294967264 }
 0x106   :  { %712 = dma.done.wait [#allocation9], 32  }
 0x107   :  { %713 = vsyncadd [#allocation9], 4294967264 }
 0x108   :  { %608 = vsyncpa [#allocation3], 1 }
 0x109   :  { %609 = vsyncpa [#allocation6], 1 }
 0x10a   :  { %610 = vsyncpa [#allocation4], 1 }
 0x10b   :  { %611 = vsyncpa [#allocation9], 1 }

</bundles_post_ra>
